<compile_context>
chip_gen: v7x
topology: tpu7x:2x2x1
jax: 0.10.0
libtpu: 0.0.40
codegen_flags: <defaults>
</compile_context>

<pallas_src>
import jax
import jax.numpy as jnp
import numpy as np
from jax.experimental import pallas as pl
from jax.experimental.pallas import tpu as pltpu

CONSTANT_VALUE = 1.0   # ConstantValue(value=1), deterministic in-script "parameter"
PAD_ID = 0             # char id 0 is strictly reserved for padding
_MAX_TB = 1024         # lanes (completions) per tile in the scaled regime (multiple of 128)


# ------------------------------ reward kernel --------------------------------
def _reward_kernel(ids_ref, rew_ref):
    # ids_ref: (L, TB) int8, completions on lanes, PAD_ID == 0.
    # Count non-pad ids per lane: compare on the VPU, accumulate in int32 over
    # sublanes (XLU), cast the per-row count to f32 once -> lane-dense (1, TB).
    counts = jnp.sum((ids_ref[...] != PAD_ID).astype(jnp.int32), axis=0, keepdims=True)
    rew_ref[...] = counts.astype(jnp.float32)


def dummy_reward(ids_lb):
    """question_length reward.

    ids_lb: (L, B) int8 char ids — completions on the lane (last) axis, 0 = pad.
    Returns (B,) float32 lengths.
    """
    L, B = ids_lb.shape

    # Tile the lane (batch) axis.  For B <= _MAX_TB use a single full-extent
    # block (always layout-legal); otherwise pad B up to a multiple of _MAX_TB
    # (padded columns are all-zero -> count 0, sliced off below).
    if B <= _MAX_TB:
        tb, b_pad = B, B
    else:
        tb = _MAX_TB
        b_pad = pl.cdiv(B, tb) * tb
        if b_pad != B:
            ids_lb = jnp.pad(ids_lb, ((0, 0), (0, b_pad - B)))
    grid = (b_pad // tb,)

    # Double-buffered int8 input tile + tiny f32 output; generous headroom, but
    # stay under v7x's 64 MiB physical VMEM. (v5e's default scoped limit is
    # only 16 MiB, so raise it explicitly once tiles grow.)
    tile_bytes = L * tb * ids_lb.dtype.itemsize
    vmem_limit = int(min(max(4 * tile_bytes, 16 * 1024 * 1024), 48 * 1024 * 1024))

    rew = pl.pallas_call(
        _reward_kernel,
        out_shape=jax.ShapeDtypeStruct((1, b_pad), jnp.float32),
        grid=grid,
        in_specs=[pl.BlockSpec((L, tb), lambda i: (0, i))],
        out_specs=pl.BlockSpec((1, tb), lambda i: (0, i)),
        compiler_params=pltpu.CompilerParams(
            dimension_semantics=("parallel",),
            vmem_limit_bytes=vmem_limit,
        ),
    )(ids_lb)
    return rew[0, :B]


# ------------------------------ forward (no kernel) ---------------------------
def dummy_forward(x, n=None):
    # forward(x) -> ConstantValue(value=1)(x, metagraph.n.item()): ignores both
    # arguments, so a wrapper-side constant fill — no custom-call dispatch.
    del n
    return jnp.full((x.shape[0],), CONSTANT_VALUE, dtype=jnp.float32)


def dummy_forward_and_reward(x, ids_lb, n=None):
    return dummy_forward(x, n), dummy_reward(ids_lb)


# ----------------------------------- main -------------------------------------
if __name__ == "__main__":
    key = jax.random.PRNGKey(0)
    B, S, L = 8, 32, 128
    n_neurons = 16  # stand-in for metagraph.n.item() (unused by ConstantValue)

    # forward input (only its batch dimension matters for the constant output)
    x = jax.random.normal(key, (B, S), dtype=jnp.float32)

    # synthetic "completions": deterministic lengths, (L, B) padded int8 char-id matrix
    lengths = np.array([5, 17, 128, 1, 64, 33, 7, 100], dtype=np.int32)
    ids_lb = np.zeros((L, B), dtype=np.int8)
    for b, ln in enumerate(lengths):
        ids_lb[:ln, b] = (np.arange(ln) % 95) + 32  # printable-ascii codes, never 0
    ids_lb = jnp.asarray(ids_lb)

    fwd, rew = jax.block_until_ready(dummy_forward_and_reward(x, ids_lb, n_neurons))

    # reference checks (pure numpy)
    assert fwd.shape == (B,) and fwd.dtype == jnp.float32
    np.testing.assert_allclose(np.asarray(fwd), np.full((B,), CONSTANT_VALUE, np.float32))
    assert rew.shape == (B,) and rew.dtype == jnp.float32
    np.testing.assert_allclose(np.asarray(rew), lengths.astype(np.float32))

    print("KERNEL_OK")
</pallas_src>

<mosaic_0001>
module attributes {stable_mosaic.version = 11 : i64} {
  func.func @_reward_kernel(%arg0: i32, %arg1: memref<128x8xi8, #tpu.memory_space<vmem>>, %arg2: memref<1x8xf32, #tpu.memory_space<vmem>>) attributes {dimension_semantics = [#tpu.dimension_semantics<parallel>], iteration_bounds = array<i64: 1>, scalar_prefetch = 0 : i64, scratch_operands = 0 : i64, tpu.core_type = #tpu.core_type<tc>, window_params = [{transform_indices = @transform_0, window_bounds = array<i64: 128, 8>}, {transform_indices = @transform_1, window_bounds = array<i64: 1, 8>}]} {
    %c0 = arith.constant 0 : index
    %c0_0 = arith.constant 0 : index
    %0 = vector.load %arg1[%c0, %c0_0] : memref<128x8xi8, #tpu.memory_space<vmem>>, vector<128x8xi8>
    %c0_i8 = arith.constant 0 : i8
    %1 = vector.broadcast %c0_i8 : i8 to vector<128x8xi8>
    %2 = arith.cmpi ne, %0, %1 : vector<128x8xi8>
    %3 = arith.extui %2 : vector<128x8xi1> to vector<128x8xi32>
    %cst = arith.constant dense<0> : vector<8xi32>
    %4 = vector.multi_reduction <add>, %3, %cst [0] : vector<128x8xi32> to vector<8xi32>
    %5 = vector.shape_cast %4 : vector<8xi32> to vector<1x8xi32>
    %6 = arith.sitofp %5 : vector<1x8xi32> to vector<1x8xf32>
    %c0_1 = arith.constant 0 : index
    %c0_2 = arith.constant 0 : index
    %7 = vector.load %arg2[%c0_1, %c0_2] : memref<1x8xf32, #tpu.memory_space<vmem>>, vector<1x8xf32>
    tpu.vector_store %arg2[%c0_1, %c0_2], %6 {strides = array<i32>} : memref<1x8xf32, #tpu.memory_space<vmem>>, vector<1x8xf32>,
    return
  }
  func.func @transform_0(%arg0: i32) -> (i32, i32) {
    %c0_i32 = arith.constant 0 : i32
    %c0_i32_0 = arith.constant 0 : i32
    return %c0_i32, %arg0 : i32, i32
  }
  func.func @transform_1(%arg0: i32) -> (i32, i32) {
    %c0_i32 = arith.constant 0 : i32
    %c0_i32_0 = arith.constant 0 : i32
    return %c0_i32, %arg0 : i32, i32
  }
}

</mosaic_0001>

<bundles_post_ra>
// kernel: tpu_custom_call.1
= control target key start
LH: loop header
LB: loop body
LE: loop exit
PB: predicated region body
PF: predicated region fallthrough
CT: control target
= control target key end

     0   :  { %6 = vsyncpa [#allocation3], 0  ;;  %v188_v16 = vmov 0   ;;  %s420_s0 = inlined_call_operand.vmem [shape: s8[128,8], index: 0, kind: input, shape index: {}]   ;;  %s421_s1 = inlined_call_operand.hbm [shape: f32[1,8], index: 1, kind: output, shape index: {}]  }
   0x1   :  { %v11_v0 = vld [vmem:[%s420_s0] sm:$0x3]  ;;  %v12_v1 = vld [vmem:[%s420_s0 + $0x2] sm:$0x3]  ;;  %v13_v2 = vld [vmem:[%s420_s0 + $0x4] sm:$0x3] }
   0x2   :  { %v14_v3 = vld [vmem:[%s420_s0 + $0x6] sm:$0x3]  ;;  %v15_v4 = vld [vmem:[%s420_s0 + $0x8] sm:$0x3]  ;;  %v16_v5 = vld [vmem:[%s420_s0 + $0xa] sm:$0x3]  ;;  %vm27_vm0 = vnez %v11_v0  ;;  %vm28_vm1 = vnez %v12_v1  ;;  %vm29_vm2 = vnez %v13_v2 }
   0x3   :  { %v17_v6 = vld [vmem:[%s420_s0 + $0xc] sm:$0x3]  ;;  %v18_v7 = vld [vmem:[%s420_s0 + $0xe] sm:$0x3]  ;;  %v19_v8 = vld [vmem:[%s420_s0 + $0x10] sm:$0x3]  ;;  %vm30_vm3 = vnez %v14_v3  ;;  %vm31_vm4 = vnez %v15_v4  ;;  %vm32_vm5 = vnez %v16_v5 }
   0x4   :  { %v20_v9 = vld [vmem:[%s420_s0 + $0x12] sm:$0x3]  ;;  %v21_v10 = vld [vmem:[%s420_s0 + $0x14] sm:$0x3]  ;;  %v22_v11 = vld [vmem:[%s420_s0 + $0x16] sm:$0x3]  ;;  %vm33_vm6 = vnez %v17_v6  ;;  %vm34_vm7 = vnez %v18_v7  ;;  %vm35_vm8 = vnez %v19_v8 }
   0x5   :  { %v23_v12 = vld [vmem:[%s420_s0 + $0x18] sm:$0x3]  ;;  %v24_v13 = vld [vmem:[%s420_s0 + $0x1a] sm:$0x3]  ;;  %vm36_vm9 = vnez %v20_v9  ;;  %v25_v14 = vld [vmem:[%s420_s0 + $0x1c] sm:$0x3]  ;;  %vm37_vm10 = vnez %v21_v10  ;;  %vm38_vm11 = vnez %v22_v11 }
   0x6   :  { %v26_v15 = vld [vmem:[%s420_s0 + $0x1e] sm:$0x3]  ;;  %vm39_vm12 = vnez %v23_v12  ;;  %vm40_vm13 = vnez %v24_v13  ;;  %vm41_vm14 = vnez %v25_v14  ;;  %v43_v17 = vsel %vm27_vm0, 16843009, %v188_v16  ;;  %s189_s0 = smov [#allocation2]  }
   0x7   :  { %v44_v18 = vsel %vm28_vm1, 16843009, %v188_v16  ;;  %vm42_vm15 = vnez %v26_v15  ;;  %v45_v19 = vsel %vm29_vm2, 16843009, %v188_v16  ;;  %v46_v20 = vsel %vm30_vm3, 16843009, %v188_v16 }
   0x8   :  { %v47_v21 = vsel %vm31_vm4, 16843009, %v188_v16  ;;  %v48_v22 = vsel %vm32_vm5, 16843009, %v188_v16  ;;  %v49_v23 = vsel %vm33_vm6, 16843009, %v188_v16  ;;  %v59_v25 = vunpack.c.0.s8 %v43_v17 }
   0x9   :  { %v50_v24 = vsel %vm34_vm7, 16843009, %v188_v16  ;;  %v51_v26 = vsel %vm35_vm8, 16843009, %v188_v16  ;;  %v52_v27 = vsel %vm36_vm9, 16843009, %v188_v16  ;;  %v60_v29 = vunpack.c.0.s8 %v44_v18 }
   0xa   :  { %v53_v28 = vsel %vm37_vm10, 16843009, %v188_v16  ;;  %v54_v30 = vsel %vm38_vm11, 16843009, %v188_v16  ;;  %v55_v31 = vsel %vm39_vm12, 16843009, %v188_v16  ;;  %v61_v33 = vunpack.c.0.s8 %v45_v19 }
   0xb   :  { %v56_v32 = vsel %vm40_vm13, 16843009, %v188_v16  ;;  %v57_v34 = vsel %vm41_vm14, 16843009, %v188_v16  ;;  %v58_v35 = vsel %vm42_vm15, 16843009, %v188_v16  ;;  %v62_v36 = vunpack.c.0.s8 %v46_v20 }
   0xc   :  { %v63_v37 = vunpack.c.0.s8 %v47_v21  ;;  %v64_v38 = vunpack.c.0.s8 %v48_v22  ;;  %v65_v39 = vunpack.c.0.s8 %v49_v23  ;;  %v66_v40 = vunpack.c.0.s8 %v50_v24  ;;  %s154_s9 = sshll.u32 %s189_s0, 4  ;;  %s155_s9 = int_to_ptr.vmem [resolvable:$true] %s154_s9 }
   0xd   :  { %v67_v41 = vunpack.c.0.s8 %v51_v26  ;;  %v68_v42 = vunpack.c.0.s8 %v52_v27  ;;  %v69_v43 = vunpack.c.0.s8 %v53_v28  ;;  %v70_v44 = vunpack.c.0.s8 %v54_v30  ;;  %s164_s10 = scalar_lea.vmem %s155_s9, 16  ;;  %s168_s11 = scalar_lea.vmem %s155_s9, 32 }
   0xe   :  { %v71_v45 = vunpack.c.0.s8 %v55_v31  ;;  %v72_v46 = vunpack.c.0.s8 %v56_v32  ;;  %v73_v47 = vunpack.c.0.s8 %v57_v34  ;;  %v74_v48 = vunpack.c.0.s8 %v58_v35  ;;  %p165_p0 = scmp.ne.s32.totalorder %s155_s9, %s164_s10  ;;  %p169_p1 = scmp.lt.s32.totalorder %s155_s9, %s155_s9 }
   0xf   :  { %vm280_vm0 = vcmp.ne.s32.totalorder %v59_v25, 0  ;;  %vm284_vm1 = vcmp.ne.s32.totalorder %v60_v29, 0  ;;  %vm288_vm2 = vcmp.ne.s32.totalorder %v61_v33, 0  ;;  %vm292_vm3 = vcmp.ne.s32.totalorder %v62_v36, 0  ;;  %p170_p2 = scmp.lt.s32.totalorder %s168_s11, %s164_s10 }
  0x10   :  { %vm296_vm4 = vcmp.ne.s32.totalorder %v63_v37, 0  ;;  %vm300_vm5 = vcmp.ne.s32.totalorder %v64_v38, 0  ;;  %vm304_vm6 = vcmp.ne.s32.totalorder %v65_v39, 0  ;;  %vm308_vm7 = vcmp.ne.s32.totalorder %v66_v40, 0 }
  0x11   :  { %vm312_vm8 = vcmp.ne.s32.totalorder %v67_v41, 0  ;;  %vm316_vm9 = vcmp.ne.s32.totalorder %v68_v42, 0  ;;  %vm320_vm10 = vcmp.ne.s32.totalorder %v69_v43, 0  ;;  %vm324_vm11 = vcmp.ne.s32.totalorder %v70_v44, 0  ;;  %p171_p3 = por %p170_p2, %p169_p1 }
  0x12   :  { %vm328_vm12 = vcmp.ne.s32.totalorder %v71_v45, 0  ;;  %vm332_vm13 = vcmp.ne.s32.totalorder %v72_v46, 0  ;;  %vm336_vm14 = vcmp.ne.s32.totalorder %v73_v47, 0  ;;  %vm340_vm15 = vcmp.ne.s32.totalorder %v74_v48, 0 }
  0x13   :  { %v91_v1 = vsel %vm280_vm0, 1, %v188_v16  ;;  %v92_v2 = vsel %vm284_vm1, 1, %v188_v16  ;;  %v93_v3 = vsel %vm288_vm2, 1, %v188_v16  ;;  %v94_v4 = vsel %vm292_vm3, 1, %v188_v16  ;;  %p172_p4 = pnand %p171_p3, %p165_p0 }
  0x14   :  { %v95_v5 = vsel %vm296_vm4, 1, %v188_v16  ;;  %v96_v6 = vsel %vm300_vm5, 1, %v188_v16  ;;  %v97_v7 = vsel %vm304_vm6, 1, %v188_v16  ;;  %v98_v8 = vsel %vm308_vm7, 1, %v188_v16 }
  0x15   :  { %v99_v9 = vsel %vm312_vm8, 1, %v188_v16  ;;  %v100_v10 = vsel %vm316_vm9, 1, %v188_v16  ;;  %v101_v11 = vsel %vm320_vm10, 1, %v188_v16  ;;  %v102_v12 = vsel %vm324_vm11, 1, %v188_v16 }
  0x16   :  { %v103_v13 = vsel %vm328_vm12, 1, %v188_v16  ;;  %v104_v14 = vsel %vm332_vm13, 1, %v188_v16  ;;  %v105_v15 = vsel %vm336_vm14, 1, %v188_v16  ;;  %v106_v17 = vsel %vm340_vm15, 1, %v188_v16 }
  0x17   :  { %vm107_vm0 = vcmask 64512   ;;  %vm146_vm1 = vcmask 57344  }
  0x18   :  { %v108_v18 = vsel %vm107_vm0, %v91_v1, 0  ;;  %v109_v19 = vsel %vm107_vm0, %v92_v2, 0  ;;  %v110_v20 = vsel %vm107_vm0, %v93_v3, 0  ;;  %v111_v21 = vsel %vm107_vm0, %v94_v4, 0 }
  0x19   :  { %v112_v22 = vsel %vm107_vm0, %v95_v5, 0  ;;  %v114_v23 = vsel %vm107_vm0, %v96_v6, 0  ;;  %v116_v24 = vsel %vm107_vm0, %v97_v7, 0  ;;  %v118_v25 = vsel %vm107_vm0, %v98_v8, 0 }
  0x1a   :  { %v113_v26 = vadd.s32 %v112_v22, %v108_v18  ;;  %v115_v27 = vadd.s32 %v114_v23, %v109_v19  ;;  %v117_v16 = vadd.s32 %v116_v24, %v110_v20  ;;  %v119_v28 = vadd.s32 %v118_v25, %v111_v21 }
  0x1b   :  { %v120_v29 = vsel %vm107_vm0, %v99_v9, 0  ;;  %v122_v30 = vsel %vm107_vm0, %v100_v10, 0  ;;  %v124_v31 = vsel %vm107_vm0, %v101_v11, 0  ;;  %v126_v32 = vsel %vm107_vm0, %v102_v12, 0 }
  0x1c   :  { %v121_v33 = vadd.s32 %v120_v29, %v113_v26  ;;  %v123_v34 = vadd.s32 %v122_v30, %v115_v27  ;;  %v125_v35 = vadd.s32 %v124_v31, %v117_v16  ;;  %v127_v36 = vadd.s32 %v126_v32, %v119_v28 }
  0x1d   :  { %v128_v37 = vsel %vm107_vm0, %v103_v13, 0  ;;  %v130_v38 = vsel %vm107_vm0, %v104_v14, 0  ;;  %v132_v39 = vsel %vm107_vm0, %v105_v15, 0  ;;  %v134_v40 = vsel %vm107_vm0, %v106_v17, 0 }
  0x1e   :  { %v129_v41 = vadd.s32 %v128_v37, %v121_v33  ;;  %v131_v42 = vadd.s32 %v130_v38, %v123_v34  ;;  %v133_v43 = vadd.s32 %v132_v39, %v125_v35  ;;  %v135_v44 = vadd.s32 %v134_v40, %v127_v36 }
  0x20   :  { %v136_v45 = vadd.s32 %v131_v42, %v129_v41  ;;  %v137_v46 = vadd.s32 %v135_v44, %v133_v43 }
  0x22   :  { %v138_v47 = vadd.s32 %v137_v46, %v136_v45 }
  0x24   :  { %v139_v48 = vrot.slane %v138_v47, 4 }
  0x26   :  { %v140_v49 = vadd.s32 %v139_v48, %v138_v47 }
  0x28   :  { %v141_v50 = vrot.slane %v140_v49, 2 }
  0x2a   :  { %v142_v51 = vadd.s32 %v141_v50, %v140_v49 }
  0x2c   :  { %v143_v52 = vrot.slane %v142_v51, 1 }
  0x2e   :  { %v144_v53 = vadd.s32 %v143_v52, %v142_v51 }
  0x30   :  { %v145_v54 = vcvt.s32.f32 %v144_v53 }
  0x32   :  { %147 = vst.msk [vmem:[#allocation2] sm:$0x1] %vm146_vm1, %v145_v54 }
  0x33   :  { %175 = shalt.err (!%p172_p4)
}
  0x34   :  { %s176_s14 = scalar_lea.hbm %s421_s1, 16 }
  0x35   :  { %p177_p5 = scmp.ne.s32.totalorder %s421_s1, %s176_s14  ;;  %p180_p6 = scmp.lt.u32.totalorder %s176_s14, %s421_s1 }
  0x37   :  { %p182_p7 = pnand %p180_p6, %p177_p5 }
  0x39   :  { %185 = shalt.err (!%p182_p7)
}
  0x3a   :  { %157 = dma.vmem_to_hbm [thread:$0]  %s155_s9, 16, %s421_s1, [#allocation3]  }
  0x3b   :  { %186 = dma.done.wait [#allocation3], 16  }
  0x3c   :  { %187 = vsyncadd [#allocation3], 4294967280 }
  0x3d   :  { %161 = vsyncpa [#allocation3], 1 }

</bundles_post_ra>
